<compile_context>
chip_gen: v7x
topology: tpu7x:2x2x1
jax: 0.10.0
libtpu: 0.0.40
codegen_flags: <defaults>
</compile_context>

<pallas_src>
import functools
import math

import jax
import jax.numpy as jnp
import numpy as np
from jax.experimental import pallas as pl
from jax.experimental.pallas import tpu as pltpu


# ---------------------------------------------------------------------------
# Fused kernel: encoder matmul -> VMEM scratch -> soft assignment -> pooling
# ---------------------------------------------------------------------------
def _dec_fused_kernel(x_ref, w_ref, b_ref, c_ref, assign_ref, repr_ref, enc_nm,
                      *, n_nodes, npt, tb, hidden, k_clusters):
    # x_ref      [TB, N*E]        (resident across the column axis)
    # w_ref      [N*E, npt*H]     (streamed column tile of W_enc)
    # b_ref      [1,   npt*H]
    # c_ref      [K, H]
    # assign_ref [N*TB, K]        (node-major rows: r = n*TB + t)
    # repr_ref   [TB, K, H]
    # enc_nm     [N*TB, H]        VMEM scratch, node-major encoded rows
    j = pl.program_id(1)

    # ---- encoder: one MXU matmul for this column tile ----------------------
    enc_tile = (
        jnp.dot(x_ref[...], w_ref[...], preferred_element_type=jnp.float32)
        + b_ref[...]
    )  # [TB, npt*H]

    # Scatter each node's H columns into the node-major scratch.  Static
    # unroll (npt is small); stores are dynamic sublane-offset block stores.
    for u in range(npt):
        row0 = pl.multiple_of((j * npt + u) * tb, tb)
        enc_nm[pl.ds(row0, tb), :] = enc_tile[:, u * hidden:(u + 1) * hidden]

    # ---- last column tile: soft assignment + cluster pooling ---------------
    @pl.when(j == pl.num_programs(1) - 1)
    def _():
        e = enc_nm[...]                       # [N*TB, H]  (all B*N rows of tile)
        c = c_ref[...]                        # [K, H]

        # logits over ALL rows in a single 2-D matmul (enc @ centers.T)
        logits = jnp.einsum("rh,kh->rk", e, c,
                            preferred_element_type=jnp.float32)   # [N*TB, K]
        logits = logits * logits

        # divide by ||c||  ==  multiply by rsqrt(sum c^2)   (EUP rsqrt)
        inv_norm = jax.lax.rsqrt(jnp.sum(c * c, axis=-1)).reshape(1, k_clusters)
        soft = logits * inv_norm

        # numerically-stable softmax over clusters; divide on the EUP
        soft = soft - jnp.max(soft, axis=-1, keepdims=True)
        p = jnp.exp(soft)
        assign = p * pl.reciprocal(jnp.sum(p, axis=-1, keepdims=True),
                                   approx=True)                   # [N*TB, K]
        assign_ref[...] = assign              # lane-dense 2-D store

        # node_repr[b] = assignment[b].T @ encoded[b]
        # Rows for local batch t are r = n*TB + t -> select them with a mask
        # (avoids any in-kernel reshape/transpose of the node-major buffer).
        if tb == 1:
            repr_ref[0, :, :] = jnp.einsum(
                "rk,rh->kh", assign, e, preferred_element_type=jnp.float32)
        else:
            rows = jax.lax.broadcasted_iota(jnp.int32, (n_nodes * tb, 1), 0)
            for t in range(tb):               # static unroll, tb is small
                a_t = jnp.where((rows % tb) == t, assign, 0.0)    # [N*TB, K]
                repr_ref[t, :, :] = jnp.einsum(
                    "rk,rh->kh", a_t, e, preferred_element_type=jnp.float32)


# ---------------------------------------------------------------------------
# Wrapper
# ---------------------------------------------------------------------------
def dec_forward(x, w_enc, b_enc, centers, *, batch_tile=None, node_tile=None):
    """DEC.forward: returns (node_repr [B,K,H], assignment [B,N,K])."""
    B, N, E = x.shape
    K, H = centers.shape
    NE, NH = w_enc.shape
    assert NE == N * E and NH == N * H
    assert b_enc.shape == (1, NH)

    # batch tiling: either the whole batch or a multiple of 8 rows (sublane tile)
    TB = B if batch_tile is None else batch_tile
    assert B % TB == 0 and (TB == B or TB % 8 == 0)
    BT = B // TB

    # node (encoder-column) tiling: stream W_enc in [N*E, npt*H] tiles.
    # Keep a streamed tile around ~1 MiB (Pallas double-buffers it); prefer
    # npt*H to be a multiple of 128 lanes at the call sites below.
    if node_tile is None:
        budget = 1 << 20
        npt = max(1, min(N, budget // (NE * H * 4)))
        while N % npt:
            npt -= 1
    else:
        npt = node_tile
    assert N % npt == 0
    NC = N // npt

    x_flat = x.reshape(B, NE)

    kernel = functools.partial(
        _dec_fused_kernel, n_nodes=N, npt=npt, tb=TB, hidden=H, k_clusters=K)

    grid_spec = pltpu.PrefetchScalarGridSpec(
        num_scalar_prefetch=0,
        grid=(BT, NC),
        in_specs=[
            pl.BlockSpec((TB, NE), lambda bt, j: (bt, 0)),        # x tile (resident over j)
            pl.BlockSpec((NE, npt * H), lambda bt, j: (0, j)),    # streamed W columns
            pl.BlockSpec((1, npt * H), lambda bt, j: (0, j)),     # bias columns
            pl.BlockSpec((K, H), lambda bt, j: (0, 0)),           # centers (tiny, resident)
        ],
        out_specs=(
            pl.BlockSpec((None, N * TB, K), lambda bt, j: (bt, 0, 0)),  # assignment (node-major)
            pl.BlockSpec((TB, K, H), lambda bt, j: (bt, 0, 0)),         # node_repr
        ),
        scratch_shapes=[pltpu.VMEM((N * TB, H), jnp.float32)],    # encoded, node-major
    )

    assign_nm, node_repr = pl.pallas_call(
        kernel,
        grid_spec=grid_spec,
        out_shape=(
            jax.ShapeDtypeStruct((BT, N * TB, K), jnp.float32),
            jax.ShapeDtypeStruct((B, K, H), jnp.float32),
        ),
        compiler_params=pltpu.CompilerParams(
            dimension_semantics=("parallel", "arbitrary"),
            # tiles are sized to stay far below this on all generations
            # (64 MiB physical VMEM on v7x, 128 MiB on v5e/v6e)
            vmem_limit_bytes=32 * 1024 * 1024,
        ),
    )(x_flat, w_enc, b_enc, centers)

    # node-major [bt, n*TB + t, k]  ->  batch-major [b, n, k]  (free XLA glue)
    assignment = (
        assign_nm.reshape(BT, N, TB, K).transpose(0, 2, 1, 3).reshape(B, N, K)
    )
    return node_repr, assignment


# ---------------------------------------------------------------------------
# Deterministic parameter construction (mirrors the PyTorch __init__ logic)
# ---------------------------------------------------------------------------
def make_cluster_centers(key, cluster_number, hidden_dimension):
    # Xavier-uniform init followed by the Gram-Schmidt orthogonalization from
    # ClusterAssignment.__init__ (orthogonal=True, cluster_centers=None).
    bound = math.sqrt(6.0 / (cluster_number + hidden_dimension))
    init = np.asarray(
        jax.random.uniform(
            key, (cluster_number, hidden_dimension), minval=-bound, maxval=bound
        ),
        dtype=np.float64,
    )
    orth = np.zeros_like(init)
    orth[0] = init[0]
    for i in range(1, cluster_number):
        proj = np.zeros(hidden_dimension, dtype=np.float64)
        for j in range(i):
            u, v = init[j], init[i]
            proj += (np.dot(u, v) / np.dot(u, u)) * u
        init[i] = init[i] - proj
        orth[i] = init[i] / np.linalg.norm(init[i])
    return jnp.asarray(orth, dtype=jnp.float32)


def make_encoder_params(key, in_features, out_features):
    # The encoder is an injected nn.Module in the reference; modeled here as a
    # single deterministic Linear(in_features -> out_features).
    k_w, k_b = jax.random.split(key)
    bound = 1.0 / math.sqrt(in_features)
    w = jax.random.uniform(
        k_w, (out_features, in_features), minval=-bound, maxval=bound,
        dtype=jnp.float32,
    )
    b = jax.random.uniform(
        k_b, (out_features,), minval=-bound, maxval=bound, dtype=jnp.float32
    )
    # stored transposed for x @ W, bias kept 2-D
    return w.T, b.reshape(1, out_features)


# ---------------------------------------------------------------------------
# Pure-JAX reference (matches the PyTorch forward)
# ---------------------------------------------------------------------------
def dec_reference(x, w_enc, b_enc, centers):
    B, N, E = x.shape
    K, H = centers.shape
    enc = (x.reshape(B, N * E) @ w_enc + b_enc).reshape(B * N, H)
    logits = (enc @ centers.T) ** 2
    soft = logits / jnp.sqrt(jnp.sum(centers * centers, axis=-1))
    assign = jax.nn.softmax(soft, axis=-1).reshape(B, N, K)
    node_repr = jnp.einsum("bnk,bnh->bkh", assign, enc.reshape(B, N, H))
    return node_repr, assign


# ---------------------------------------------------------------------------
if __name__ == "__main__":
    B, N, E = 2, 8, 16          # batch, nodes, input embedding dim
    H = 32                      # hidden dimension per node (encoder output)
    K = 4                       # number of clusters

    key = jax.random.PRNGKey(0)
    k_x, k_c, k_e, k_x2 = jax.random.split(key, 4)

    x = jax.random.normal(k_x, (B, N, E), dtype=jnp.float32)
    centers = make_cluster_centers(k_c, K, H)                    # [K, H]
    w_enc, b_enc = make_encoder_params(k_e, N * E, N * H)        # [N*E,N*H], [1,N*H]

    repr_ref, assign_ref = dec_reference(x, w_enc, b_enc, centers)

    # approx=True EUP reciprocal in the softmax => slightly loose tolerances
    ATOL = RTOL = 5e-3

    # 1) default tiling (single node tile at this toy size)
    node_repr, assignment = dec_forward(x, w_enc, b_enc, centers)
    jax.block_until_ready((node_repr, assignment))
    assert jnp.allclose(assignment, assign_ref, atol=ATOL, rtol=RTOL), "assignment mismatch"
    assert jnp.allclose(node_repr, repr_ref, atol=ATOL, rtol=RTOL), "node_repr mismatch"

    # 2) exercise the streamed-W path: 2 column tiles of 128 lanes each
    node_repr2, assignment2 = dec_forward(x, w_enc, b_enc, centers, node_tile=4)
    jax.block_until_ready((node_repr2, assignment2))
    assert jnp.allclose(assignment2, assign_ref, atol=ATOL, rtol=RTOL), "assignment mismatch (tiled)"
    assert jnp.allclose(node_repr2, repr_ref, atol=ATOL, rtol=RTOL), "node_repr mismatch (tiled)"

    # 3) bigger batch: 2 "parallel" batch tiles x 2 column tiles
    B2 = 16
    x2 = jax.random.normal(k_x2, (B2, N, E), dtype=jnp.float32)
    repr_ref3, assign_ref3 = dec_reference(x2, w_enc, b_enc, centers)
    node_repr3, assignment3 = dec_forward(
        x2, w_enc, b_enc, centers, batch_tile=8, node_tile=4)
    jax.block_until_ready((node_repr3, assignment3))
    assert jnp.allclose(assignment3, assign_ref3, atol=ATOL, rtol=RTOL), "assignment mismatch (B=16)"
    assert jnp.allclose(node_repr3, repr_ref3, atol=ATOL, rtol=RTOL), "node_repr mismatch (B=16)"

    print("KERNEL_OK")
</pallas_src>

<mosaic_0001>
module attributes {stable_mosaic.version = 11 : i64} {
  func.func @_dec_fused_kernel(%arg0: i32, %arg1: i32, %arg2: memref<2x128xf32, #tpu.memory_space<vmem>>, %arg3: memref<128x256xf32, #tpu.memory_space<vmem>>, %arg4: memref<1x256xf32, #tpu.memory_space<vmem>>, %arg5: memref<4x32xf32, #tpu.memory_space<vmem>>, %arg6: memref<1x16x4xf32, #tpu.memory_space<vmem>>, %arg7: memref<2x4x32xf32, #tpu.memory_space<vmem>>, %arg8: memref<16x32xf32, #tpu.memory_space<vmem>>) attributes {dimension_semantics = [#tpu.dimension_semantics<parallel>, #tpu.dimension_semantics<arbitrary>], iteration_bounds = array<i64: 1, 1>, scalar_prefetch = 0 : i64, scratch_operands = 1 : i64, tpu.core_type = #tpu.core_type<tc>, window_params = [{transform_indices = @transform_0, window_bounds = array<i64: 2, 128>}, {transform_indices = @transform_1, window_bounds = array<i64: 128, 256>}, {transform_indices = @transform_2, window_bounds = array<i64: 1, 256>}, {pipeline_mode = #tpu.pipeline_mode<synchronous>, transform_indices = @transform_3, window_bounds = array<i64: 4, 32>}, {transform_indices = @transform_4, window_bounds = array<i64: 1, 16, 4>}, {transform_indices = @transform_5, window_bounds = array<i64: 2, 4, 32>}]} {
    %c0 = arith.constant 0 : index
    %c0_0 = arith.constant 0 : index
    %0 = vector.load %arg2[%c0, %c0_0] : memref<2x128xf32, #tpu.memory_space<vmem>>, vector<2x128xf32>
    %c0_1 = arith.constant 0 : index
    %c0_2 = arith.constant 0 : index
    %1 = vector.load %arg3[%c0_1, %c0_2] : memref<128x256xf32, #tpu.memory_space<vmem>>, vector<128x256xf32>
    %cst = arith.constant dense<0.000000e+00> : vector<2x256xf32>
    %2 = tpu.matmul %0, %1, %cst {dimension_numbers = #tpu.dot_dimension_numbers<[1], [0], [0], [1], [0, 0, 1, 1], [], []>} : vector<2x128xf32>, vector<128x256xf32>, vector<2x256xf32> -> vector<2x256xf32>
    %c0_3 = arith.constant 0 : index
    %c0_4 = arith.constant 0 : index
    %3 = vector.load %arg4[%c0_3, %c0_4] : memref<1x256xf32, #tpu.memory_space<vmem>>, vector<1x256xf32>
    %4 = vector.broadcast %3 : vector<1x256xf32> to vector<2x256xf32>
    %5 = arith.addf %2, %4 : vector<2x256xf32>
    %c8_i32 = arith.constant 8 : i32
    %6 = arith.muli %arg1, %c8_i32 : i32
    %c0_i32 = arith.constant 0 : i32
    %7 = arith.addi %6, %c0_i32 : i32
    %c2_i32 = arith.constant 2 : i32
    %8 = arith.muli %7, %c2_i32 : i32
    %9 = tpu.assume_multiple %8, 2 : i32
    %10 = vector.extract_strided_slice %5 {offsets = [0, 0], sizes = [2, 32], strides = [1, 1]} : vector<2x256xf32> to vector<2x32xf32>
    %11 = arith.index_cast %9 : i32 to index
    %c0_5 = arith.constant 0 : index
    %12 = vector.load %arg8[%11, %c0_5] : memref<16x32xf32, #tpu.memory_space<vmem>>, vector<2x32xf32>
    tpu.vector_store %arg8[%11, %c0_5], %10 {strides = array<i32>} : memref<16x32xf32, #tpu.memory_space<vmem>>, vector<2x32xf32>,
    %c8_i32_6 = arith.constant 8 : i32
    %13 = arith.muli %arg1, %c8_i32_6 : i32
    %c1_i32 = arith.constant 1 : i32
    %14 = arith.addi %13, %c1_i32 : i32
    %c2_i32_7 = arith.constant 2 : i32
    %15 = arith.muli %14, %c2_i32_7 : i32
    %16 = tpu.assume_multiple %15, 2 : i32
    %17 = vector.extract_strided_slice %5 {offsets = [0, 32], sizes = [2, 32], strides = [1, 1]} : vector<2x256xf32> to vector<2x32xf32>
    %18 = arith.index_cast %16 : i32 to index
    %c0_8 = arith.constant 0 : index
    %19 = vector.load %arg8[%18, %c0_8] : memref<16x32xf32, #tpu.memory_space<vmem>>, vector<2x32xf32>
    tpu.vector_store %arg8[%18, %c0_8], %17 {strides = array<i32>} : memref<16x32xf32, #tpu.memory_space<vmem>>, vector<2x32xf32>,
    %c8_i32_9 = arith.constant 8 : i32
    %20 = arith.muli %arg1, %c8_i32_9 : i32
    %c2_i32_10 = arith.constant 2 : i32
    %21 = arith.addi %20, %c2_i32_10 : i32
    %c2_i32_11 = arith.constant 2 : i32
    %22 = arith.muli %21, %c2_i32_11 : i32
    %23 = tpu.assume_multiple %22, 2 : i32
    %24 = vector.extract_strided_slice %5 {offsets = [0, 64], sizes = [2, 32], strides = [1, 1]} : vector<2x256xf32> to vector<2x32xf32>
    %25 = arith.index_cast %23 : i32 to index
    %c0_12 = arith.constant 0 : index
    %26 = vector.load %arg8[%25, %c0_12] : memref<16x32xf32, #tpu.memory_space<vmem>>, vector<2x32xf32>
    tpu.vector_store %arg8[%25, %c0_12], %24 {strides = array<i32>} : memref<16x32xf32, #tpu.memory_space<vmem>>, vector<2x32xf32>,
    %c8_i32_13 = arith.constant 8 : i32
    %27 = arith.muli %arg1, %c8_i32_13 : i32
    %c3_i32 = arith.constant 3 : i32
    %28 = arith.addi %27, %c3_i32 : i32
    %c2_i32_14 = arith.constant 2 : i32
    %29 = arith.muli %28, %c2_i32_14 : i32
    %30 = tpu.assume_multiple %29, 2 : i32
    %31 = vector.extract_strided_slice %5 {offsets = [0, 96], sizes = [2, 32], strides = [1, 1]} : vector<2x256xf32> to vector<2x32xf32>
    %32 = arith.index_cast %30 : i32 to index
    %c0_15 = arith.constant 0 : index
    %33 = vector.load %arg8[%32, %c0_15] : memref<16x32xf32, #tpu.memory_space<vmem>>, vector<2x32xf32>
    tpu.vector_store %arg8[%32, %c0_15], %31 {strides = array<i32>} : memref<16x32xf32, #tpu.memory_space<vmem>>, vector<2x32xf32>,
    %c8_i32_16 = arith.constant 8 : i32
    %34 = arith.muli %arg1, %c8_i32_16 : i32
    %c4_i32 = arith.constant 4 : i32
    %35 = arith.addi %34, %c4_i32 : i32
    %c2_i32_17 = arith.constant 2 : i32
    %36 = arith.muli %35, %c2_i32_17 : i32
    %37 = tpu.assume_multiple %36, 2 : i32
    %38 = vector.extract_strided_slice %5 {offsets = [0, 128], sizes = [2, 32], strides = [1, 1]} : vector<2x256xf32> to vector<2x32xf32>
    %39 = arith.index_cast %37 : i32 to index
    %c0_18 = arith.constant 0 : index
    %40 = vector.load %arg8[%39, %c0_18] : memref<16x32xf32, #tpu.memory_space<vmem>>, vector<2x32xf32>
    tpu.vector_store %arg8[%39, %c0_18], %38 {strides = array<i32>} : memref<16x32xf32, #tpu.memory_space<vmem>>, vector<2x32xf32>,
    %c8_i32_19 = arith.constant 8 : i32
    %41 = arith.muli %arg1, %c8_i32_19 : i32
    %c5_i32 = arith.constant 5 : i32
    %42 = arith.addi %41, %c5_i32 : i32
    %c2_i32_20 = arith.constant 2 : i32
    %43 = arith.muli %42, %c2_i32_20 : i32
    %44 = tpu.assume_multiple %43, 2 : i32
    %45 = vector.extract_strided_slice %5 {offsets = [0, 160], sizes = [2, 32], strides = [1, 1]} : vector<2x256xf32> to vector<2x32xf32>
    %46 = arith.index_cast %44 : i32 to index
    %c0_21 = arith.constant 0 : index
    %47 = vector.load %arg8[%46, %c0_21] : memref<16x32xf32, #tpu.memory_space<vmem>>, vector<2x32xf32>
    tpu.vector_store %arg8[%46, %c0_21], %45 {strides = array<i32>} : memref<16x32xf32, #tpu.memory_space<vmem>>, vector<2x32xf32>,
    %c8_i32_22 = arith.constant 8 : i32
    %48 = arith.muli %arg1, %c8_i32_22 : i32
    %c6_i32 = arith.constant 6 : i32
    %49 = arith.addi %48, %c6_i32 : i32
    %c2_i32_23 = arith.constant 2 : i32
    %50 = arith.muli %49, %c2_i32_23 : i32
    %51 = tpu.assume_multiple %50, 2 : i32
    %52 = vector.extract_strided_slice %5 {offsets = [0, 192], sizes = [2, 32], strides = [1, 1]} : vector<2x256xf32> to vector<2x32xf32>
    %53 = arith.index_cast %51 : i32 to index
    %c0_24 = arith.constant 0 : index
    %54 = vector.load %arg8[%53, %c0_24] : memref<16x32xf32, #tpu.memory_space<vmem>>, vector<2x32xf32>
    tpu.vector_store %arg8[%53, %c0_24], %52 {strides = array<i32>} : memref<16x32xf32, #tpu.memory_space<vmem>>, vector<2x32xf32>,
    %c8_i32_25 = arith.constant 8 : i32
    %55 = arith.muli %arg1, %c8_i32_25 : i32
    %c7_i32 = arith.constant 7 : i32
    %56 = arith.addi %55, %c7_i32 : i32
    %c2_i32_26 = arith.constant 2 : i32
    %57 = arith.muli %56, %c2_i32_26 : i32
    %58 = tpu.assume_multiple %57, 2 : i32
    %59 = vector.extract_strided_slice %5 {offsets = [0, 224], sizes = [2, 32], strides = [1, 1]} : vector<2x256xf32> to vector<2x32xf32>
    %60 = arith.index_cast %58 : i32 to index
    %c0_27 = arith.constant 0 : index
    %61 = vector.load %arg8[%60, %c0_27] : memref<16x32xf32, #tpu.memory_space<vmem>>, vector<2x32xf32>
    tpu.vector_store %arg8[%60, %c0_27], %59 {strides = array<i32>} : memref<16x32xf32, #tpu.memory_space<vmem>>, vector<2x32xf32>,
    %c0_i32_28 = arith.constant 0 : i32
    %62 = arith.cmpi eq, %arg1, %c0_i32_28 : i32
    %63 = arith.extui %62 : i1 to i32
    %c0_i32_29 = arith.constant 0 : i32
    %64 = arith.cmpi ne, %63, %c0_i32_29 : i32
    scf.if %64 {
      %c0_30 = arith.constant 0 : index
      %c0_31 = arith.constant 0 : index
      %65 = vector.load %arg8[%c0_30, %c0_31] : memref<16x32xf32, #tpu.memory_space<vmem>>, vector<16x32xf32>
      %c0_32 = arith.constant 0 : index
      %c0_33 = arith.constant 0 : index
      %66 = vector.load %arg5[%c0_32, %c0_33] : memref<4x32xf32, #tpu.memory_space<vmem>>, vector<4x32xf32>
      "tpu.trace_start"() <{level = 10 : i32, message = "rh,kh->rk"}> : () -> ()
      %cst_34 = arith.constant dense<0.000000e+00> : vector<16x4xf32>
      %67 = tpu.matmul %65, %66, %cst_34 {dimension_numbers = #tpu.dot_dimension_numbers<[1], [1], [0], [0], [0, 0, 1, 0], [], []>} : vector<16x32xf32>, vector<4x32xf32>, vector<16x4xf32> -> vector<16x4xf32>
      "tpu.trace_stop"() : () -> ()
      %68 = arith.mulf %67, %67 : vector<16x4xf32>
      %69 = arith.mulf %66, %66 : vector<4x32xf32>
      %cst_35 = arith.constant dense<0.000000e+00> : vector<4xf32>
      %70 = vector.multi_reduction <add>, %69, %cst_35 [1] : vector<4x32xf32> to vector<4xf32>
      %71 = math.rsqrt %70 : vector<4xf32>
      %72 = vector.shape_cast %71 : vector<4xf32> to vector<1x4xf32>
      %73 = vector.broadcast %72 : vector<1x4xf32> to vector<16x4xf32>
      %74 = arith.mulf %68, %73 : vector<16x4xf32>
      %cst_36 = arith.constant dense<0xFF800000> : vector<16xf32>
      %75 = vector.multi_reduction <maximumf>, %74, %cst_36 [1] : vector<16x4xf32> to vector<16xf32>
      %76 = vector.shape_cast %75 : vector<16xf32> to vector<16x1xf32>
      %77 = vector.broadcast %76 : vector<16x1xf32> to vector<16x4xf32>
      %78 = arith.subf %74, %77 : vector<16x4xf32>
      %79 = math.exp %78 : vector<16x4xf32>
      %cst_37 = arith.constant dense<0.000000e+00> : vector<16xf32>
      %80 = vector.multi_reduction <add>, %79, %cst_37 [1] : vector<16x4xf32> to vector<16xf32>
      %81 = vector.shape_cast %80 : vector<16xf32> to vector<16x1xf32>
      %82 = tpu.reciprocal %81 {approx = true} : vector<16x1xf32> -> vector<16x1xf32>
      %83 = vector.broadcast %82 : vector<16x1xf32> to vector<16x4xf32>
      %84 = arith.mulf %79, %83 : vector<16x4xf32>
      %c0_38 = arith.constant 0 : index
      %c0_39 = arith.constant 0 : index
      %c0_40 = arith.constant 0 : index
      %85 = vector.load %arg6[%c0_38, %c0_39, %c0_40] : memref<1x16x4xf32, #tpu.memory_space<vmem>>, vector<1x16x4xf32>
      %86 = vector.shape_cast %85 : vector<1x16x4xf32> to vector<16x4xf32>
      %87 = vector.shape_cast %84 : vector<16x4xf32> to vector<1x16x4xf32>
      tpu.vector_store %arg6[%c0_38, %c0_39, %c0_40], %87 {strides = array<i32>} : memref<1x16x4xf32, #tpu.memory_space<vmem>>, vector<1x16x4xf32>,
      %88 = tpu.iota {dimensions = array<i32: 0>} : vector<16x1xi32>
      %c2_i32_41 = arith.constant 2 : i32
      %c0_i32_42 = arith.constant 0 : i32
      %89 = arith.cmpi eq, %c2_i32_41, %c0_i32_42 : i32
      %c1_i32_43 = arith.constant 1 : i32
      %90 = arith.select %89, %c1_i32_43, %c2_i32_41 : i32
      %91 = vector.broadcast %90 : i32 to vector<16x1xi32>
      %92 = arith.remsi %88, %91 : vector<16x1xi32>
      %c0_i32_44 = arith.constant 0 : i32
      %93 = vector.broadcast %c0_i32_44 : i32 to vector<16x1xi32>
      %94 = arith.cmpi ne, %92, %93 : vector<16x1xi32>
      %c0_i32_45 = arith.constant 0 : i32
      %95 = vector.broadcast %c0_i32_45 : i32 to vector<16x1xi32>
      %96 = arith.cmpi slt, %92, %95 : vector<16x1xi32>
      %c0_i32_46 = arith.constant 0 : i32
      %97 = arith.cmpi slt, %90, %c0_i32_46 : i32
      %98 = vector.broadcast %97 : i1 to vector<16x1xi1>
      %99 = vector.broadcast %98 : vector<16x1xi1> to vector<16x1xi1>
      %100 = arith.xori %96, %99 : vector<16x1xi1>
      %101 = arith.andi %100, %94 : vector<16x1xi1>
      %102 = vector.broadcast %90 : i32 to vector<16x1xi32>
      %103 = arith.addi %92, %102 : vector<16x1xi32>
      %104 = arith.select %101, %103, %92 : vector<16x1xi1>, vector<16x1xi32>
      %c0_i32_47 = arith.constant 0 : i32
      %105 = vector.broadcast %c0_i32_47 : i32 to vector<16x1xi32>
      %106 = arith.cmpi eq, %104, %105 : vector<16x1xi32>
      %cst_48 = arith.constant 0.000000e+00 : f32
      %107 = vector.shape_cast %106 : vector<16x1xi1> to vector<16x1xi1>
      %108 = vector.broadcast %107 : vector<16x1xi1> to vector<16x4xi1>
      %109 = vector.broadcast %cst_48 : f32 to vector<16x4xf32>
      %110 = arith.select %108, %84, %109 : vector<16x4xi1>, vector<16x4xf32>
      "tpu.trace_start"() <{level = 10 : i32, message = "rk,rh->kh"}> : () -> ()
      %cst_49 = arith.constant dense<0.000000e+00> : vector<4x32xf32>
      %111 = tpu.matmul %110, %65, %cst_49 {dimension_numbers = #tpu.dot_dimension_numbers<[0], [0], [1], [1], [0, 1, 1, 1], [], []>} : vector<16x4xf32>, vector<16x32xf32>, vector<4x32xf32> -> vector<4x32xf32>
      "tpu.trace_stop"() : () -> ()
      %c0_50 = arith.constant 0 : index
      %c0_51 = arith.constant 0 : index
      %c0_52 = arith.constant 0 : index
      %112 = vector.load %arg7[%c0_50, %c0_51, %c0_52] : memref<2x4x32xf32, #tpu.memory_space<vmem>>, vector<1x4x32xf32>
      %113 = vector.shape_cast %112 : vector<1x4x32xf32> to vector<4x32xf32>
      %114 = vector.shape_cast %111 : vector<4x32xf32> to vector<1x4x32xf32>
      tpu.vector_store %arg7[%c0_50, %c0_51, %c0_52], %114 {strides = array<i32>} : memref<2x4x32xf32, #tpu.memory_space<vmem>>, vector<1x4x32xf32>,
      %c2_i32_53 = arith.constant 2 : i32
      %c0_i32_54 = arith.constant 0 : i32
      %115 = arith.cmpi eq, %c2_i32_53, %c0_i32_54 : i32
      %c1_i32_55 = arith.constant 1 : i32
      %116 = arith.select %115, %c1_i32_55, %c2_i32_53 : i32
      %117 = vector.broadcast %116 : i32 to vector<16x1xi32>
      %118 = arith.remsi %88, %117 : vector<16x1xi32>
      %c0_i32_56 = arith.constant 0 : i32
      %119 = vector.broadcast %c0_i32_56 : i32 to vector<16x1xi32>
      %120 = arith.cmpi ne, %118, %119 : vector<16x1xi32>
      %c0_i32_57 = arith.constant 0 : i32
      %121 = vector.broadcast %c0_i32_57 : i32 to vector<16x1xi32>
      %122 = arith.cmpi slt, %118, %121 : vector<16x1xi32>
      %c0_i32_58 = arith.constant 0 : i32
      %123 = arith.cmpi slt, %116, %c0_i32_58 : i32
      %124 = vector.broadcast %123 : i1 to vector<16x1xi1>
      %125 = vector.broadcast %124 : vector<16x1xi1> to vector<16x1xi1>
      %126 = arith.xori %122, %125 : vector<16x1xi1>
      %127 = arith.andi %126, %120 : vector<16x1xi1>
      %128 = vector.broadcast %116 : i32 to vector<16x1xi32>
      %129 = arith.addi %118, %128 : vector<16x1xi32>
      %130 = arith.select %127, %129, %118 : vector<16x1xi1>, vector<16x1xi32>
      %c1_i32_59 = arith.constant 1 : i32
      %131 = vector.broadcast %c1_i32_59 : i32 to vector<16x1xi32>
      %132 = arith.cmpi eq, %130, %131 : vector<16x1xi32>
      %cst_60 = arith.constant 0.000000e+00 : f32
      %133 = vector.shape_cast %132 : vector<16x1xi1> to vector<16x1xi1>
      %134 = vector.broadcast %133 : vector<16x1xi1> to vector<16x4xi1>
      %135 = vector.broadcast %cst_60 : f32 to vector<16x4xf32>
      %136 = arith.select %134, %84, %135 : vector<16x4xi1>, vector<16x4xf32>
      "tpu.trace_start"() <{level = 10 : i32, message = "rk,rh->kh"}> : () -> ()
      %cst_61 = arith.constant dense<0.000000e+00> : vector<4x32xf32>
      %137 = tpu.matmul %136, %65, %cst_61 {dimension_numbers = #tpu.dot_dimension_numbers<[0], [0], [1], [1], [0, 1, 1, 1], [], []>} : vector<16x4xf32>, vector<16x32xf32>, vector<4x32xf32> -> vector<4x32xf32>
      "tpu.trace_stop"() : () -> ()
      %c1 = arith.constant 1 : index
      %c0_62 = arith.constant 0 : index
      %c0_63 = arith.constant 0 : index
      %138 = vector.load %arg7[%c1, %c0_62, %c0_63] : memref<2x4x32xf32, #tpu.memory_space<vmem>>, vector<1x4x32xf32>
      %139 = vector.shape_cast %138 : vector<1x4x32xf32> to vector<4x32xf32>
      %140 = vector.shape_cast %137 : vector<4x32xf32> to vector<1x4x32xf32>
      tpu.vector_store %arg7[%c1, %c0_62, %c0_63], %140 {strides = array<i32>} : memref<2x4x32xf32, #tpu.memory_space<vmem>>, vector<1x4x32xf32>,
    } else {
    }
    return
  }
  func.func @transform_0(%arg0: i32, %arg1: i32) -> (i32, i32) {
    %c0_i32 = arith.constant 0 : i32
    %c0_i32_0 = arith.constant 0 : i32
    return %arg0, %c0_i32 : i32, i32
  }
  func.func @transform_1(%arg0: i32, %arg1: i32) -> (i32, i32) {
    %c0_i32 = arith.constant 0 : i32
    %c0_i32_0 = arith.constant 0 : i32
    return %c0_i32, %arg1 : i32, i32
  }
  func.func @transform_2(%arg0: i32, %arg1: i32) -> (i32, i32) {
    %c0_i32 = arith.constant 0 : i32
    %c0_i32_0 = arith.constant 0 : i32
    return %c0_i32, %arg1 : i32, i32
  }
  func.func @transform_3(%arg0: i32, %arg1: i32) -> (i32, i32) {
    %c0_i32 = arith.constant 0 : i32
    %c0_i32_0 = arith.constant 0 : i32
    %c0_i32_1 = arith.constant 0 : i32
    return %c0_i32, %c0_i32_0 : i32, i32
  }
  func.func @transform_4(%arg0: i32, %arg1: i32) -> (i32, i32, i32) {
    %c0_i32 = arith.constant 0 : i32
    %c0_i32_0 = arith.constant 0 : i32
    %c0_i32_1 = arith.constant 0 : i32
    return %arg0, %c0_i32, %c0_i32_0 : i32, i32, i32
  }
  func.func @transform_5(%arg0: i32, %arg1: i32) -> (i32, i32, i32) {
    %c0_i32 = arith.constant 0 : i32
    %c0_i32_0 = arith.constant 0 : i32
    %c0_i32_1 = arith.constant 0 : i32
    return %arg0, %c0_i32, %c0_i32_0 : i32, i32, i32
  }
}

</mosaic_0001>

<bundles_post_ra>
// kernel: tpu_custom_call.1
= control target key start
LH: loop header
LB: loop body
LE: loop exit
PB: predicated region body
PF: predicated region fallthrough
CT: control target
= control target key end

     0   :  { %11 = vsyncpa [#allocation4], 0  ;;  %s951_s0 = inlined_call_operand.hbm [shape: f32[2,128], index: 0, kind: input, shape index: {}]   ;;  %s952_s1 = inlined_call_operand.hbm [shape: f32[128,256], index: 1, kind: input, shape index: {}]   ;;  %s953_s2 = inlined_call_operand.vmem [shape: f32[1,256], index: 2, kind: input, shape index: {}]   ;;  %s954_s3 = inlined_call_operand.vmem [shape: f32[4,32], index: 3, kind: input, shape index: {}]   ;;  %s955_s4 = inlined_call_operand.vmem [shape: f32[1,16,4], index: 4, kind: output, shape index: {0}]   ;;  %s956_s5 = inlined_call_operand.hbm [shape: f32[2,4,32], index: 5, kind: output, shape index: {1}]  }
   0x1   :  { %12 = vsyncpa [#allocation7], 0 }
   0x2   :  { %13 = vsyncpa [#allocation5], 0  ;;  %s813_s18 = smov [#allocation3]   ;;  %s814_s20 = smov [#allocation6]  }
   0x3   :  { %s20_s19 = sshll.u32 %s813_s18, 4  ;;  %s29_s21 = sshll.u32 %s814_s20, 4  ;;  %s21_s19 = int_to_ptr.vmem [resolvable:$true] %s20_s19  ;;  %s855_s21 = int_to_ptr.vmem [resolvable:$true] %s29_s21 }
   0x4   :  { %s741_s24 = scalar_lea.hbm %s951_s0, 32 }
   0x5   :  { %p742_p0 = scmp.ne.s32.totalorder %s951_s0, %s741_s24  ;;  %p745_p1 = scmp.lt.u32.totalorder %s741_s24, %s951_s0 }
   0x7   :  { %p747_p2 = pnand %p745_p1, %p742_p0 }
   0x9   :  { %750 = shalt.err (!%p747_p2)
}
   0xa   :  { %s751_s29 = scalar_lea.vmem %s21_s19, 32  ;;  %p756_p4 = scmp.lt.s32.totalorder %s21_s19, %s21_s19 }
   0xb   :  { %p752_p3 = scmp.ne.s32.totalorder %s21_s19, %s751_s29  ;;  %p757_p5 = scmp.lt.s32.totalorder %s751_s29, %s751_s29 }
   0xd   :  { %p758_p6 = por %p757_p5, %p756_p4 }
   0xf   :  { %p759_p7 = pnand %p758_p6, %p752_p3 }
  0x11   :  { %762 = shalt.err (!%p759_p7)
}
  0x12   :  { %23 = dma.hbm_to_vmem [thread:$0]  %s951_s0, 32, %s21_s19, [#allocation4]  }
  0x13   :  { %s763_s9 = scalar_lea.hbm %s952_s1, 4096 }
  0x14   :  { %p764_p8 = scmp.ne.s32.totalorder %s952_s1, %s763_s9  ;;  %p767_p9 = scmp.lt.u32.totalorder %s763_s9, %s952_s1 }
  0x16   :  { %p769_p10 = pnand %p767_p9, %p764_p8 }
  0x18   :  { %772 = shalt.err (!%p769_p10)
}
  0x19   :  { %s773_s14 = scalar_lea.vmem %s855_s21, 4096  ;;  %p778_p12 = scmp.lt.s32.totalorder %s855_s21, %s855_s21 }
  0x1a   :  { %p774_p11 = scmp.ne.s32.totalorder %s855_s21, %s773_s14  ;;  %p779_p13 = scmp.lt.s32.totalorder %s773_s14, %s773_s14 }
  0x1c   :  { %p780_p0 = por %p779_p13, %p778_p12 }
  0x1e   :  { %p781_p1 = pnand %p780_p0, %p774_p11 }
  0x20   :  { %784 = shalt.err (!%p781_p1)
}
  0x21   :  { %s815_s0 = smov 256   ;;  %s816_s15 = smov 16  }
  0x22   :  { %35 = dma.hbm_to_vmem [thread:$0]  %s952_s1, 4096, %s855_s21, [#allocation7], %s815_s0, %s815_s0, %s816_s15  }
  0x23   :  { %807 = dma.done.wait [#allocation4], 32  }
  0x24   :  { %808 = vsyncadd [#allocation4], 4294967264 }
  0x25   :  { %809 = dma.done.wait [#allocation7], 4096  }
  0x26   :  { %810 = vsyncadd [#allocation7], 4294963200  ;;  %v817_v0 = vmov 0.0   ;;  %v48_v1 = vld [vmem:[#allocation6 + $0x8] sm:$0xff]  ;;  %v50_v2 = vld [vmem:[#allocation6 + $0x18] sm:$0xff]  ;;  %v81_v50 = vlaneseq  ;;  %vm222_vm0 = vcmask 261120  }
  0x27   :  { %155 = vmatprep.mubr.f32.mxu0 %v817_v0  ;;  %v47_v3 = vld [vmem:[#allocation6] sm:$0xff]  ;;  %v681_v4 = vpack.c.bf16 %v50_v2, %v48_v1  ;;  %v49_v5 = vld [vmem:[#allocation6 + $0x10] sm:$0xff]  ;;  %v52_v6 = vld [vmem:[#allocation6 + $0x28] sm:$0xff]  ;;  %vm164_vm1 = vcmask 254976   ;;  %s819_s21 = smov 96   ;;  %v821_v62 = vmov 0.0|0.0  }
  0x28   :  { %v54_v7 = vld [vmem:[#allocation6 + $0x38] sm:$0xff]  ;;  %v683_v8 = vpack.c.bf16 %v49_v5, %v47_v3  ;;  %v51_v10 = vld [vmem:[#allocation6 + $0x20] sm:$0xff]  ;;  %v53_v11 = vld [vmem:[#allocation6 + $0x30] sm:$0xff]  ;;  %v887_v51 = vshrl.u32 %v81_v50, 7  ;;  %vm310_vm2 = vcmask 257024   ;;  %vm337_vm3 = vcmask 31744  }
  0x29   :  { %v685_v9 = vpack.c.bf16 %v54_v7, %v52_v6  ;;  %v56_v12 = vld [vmem:[#allocation6 + $0x48] sm:$0xff]  ;;  %682 = vmatprep.subr.bf16.mxu0 %v681_v4  ;;  %v58_v13 = vld [vmem:[#allocation6 + $0x58] sm:$0xff]  ;;  %v687_v14 = vpack.c.bf16 %v53_v11, %v51_v10  ;;  %v55_v16 = vld [vmem:[#allocation6 + $0x40] sm:$0xff]  ;;  %vm822_vm4 = vmmov 0   ;;  %vm429_vm9 = vcmask 130048  }
  0x2a   :  { %684 = vmatpush1.bf16.msra.mxu0 %v683_v8  ;;  %v689_v15 = vpack.c.bf16 %v58_v13, %v56_v12  ;;  %v57_v17 = vld [vmem:[#allocation6 + $0x50] sm:$0xff]  ;;  %v60_v18 = vld [vmem:[#allocation6 + $0x68] sm:$0xff]  ;;  %v62_v19 = vld [vmem:[#allocation6 + $0x78] sm:$0xff]  ;;  %v83_v52 = vsub.s32 0, %v887_v51  ;;  %v87_v54 = vsub.s32 1, %v887_v51  ;;  %v317_v12 = vand.u32 127, %v81_v50 }
  0x2b   :  { %686 = vmatprep.subr.bf16.mxu0 %v685_v9  ;;  %v691_v20 = vpack.c.bf16 %v57_v17, %v55_v16  ;;  %v693_v21 = vpack.c.bf16 %v62_v19, %v60_v18  ;;  %v59_v22 = vld [vmem:[#allocation6 + $0x60] sm:$0xff]  ;;  %v61_v23 = vld [vmem:[#allocation6 + $0x70] sm:$0xff]  ;;  %v64_v24 = vld [vmem:[#allocation6 + $0x88] sm:$0xff] }
  0x2c   :  { %v66_v25 = vld [vmem:[#allocation6 + $0x98] sm:$0xff]  ;;  %v695_v26 = vpack.c.bf16 %v61_v23, %v59_v22  ;;  %v63_v28 = vld [vmem:[#allocation6 + $0x80] sm:$0xff]  ;;  %v65_v29 = vld [vmem:[#allocation6 + $0x90] sm:$0xff]  ;;  %v320_v13 = vsub.s32 %v317_v12, %v887_v51 }
  0x2d   :  { %v697_v27 = vpack.c.bf16 %v66_v25, %v64_v24  ;;  %v68_v30 = vld [vmem:[#allocation6 + $0xa8] sm:$0xff]  ;;  %v70_v31 = vld [vmem:[#allocation6 + $0xb8] sm:$0xff]  ;;  %v699_v32 = vpack.c.bf16 %v65_v29, %v63_v28  ;;  %v67_v34 = vld [vmem:[#allocation6 + $0xa0] sm:$0xff] }
  0x2e   :  { %688 = vmatpush1.bf16.msra.mxu0 %v687_v14  ;;  %v701_v33 = vpack.c.bf16 %v70_v31, %v68_v30  ;;  %v69_v35 = vld [vmem:[#allocation6 + $0xb0] sm:$0xff]  ;;  %v72_v36 = vld [vmem:[#allocation6 + $0xc8] sm:$0xff]  ;;  %v74_v37 = vld [vmem:[#allocation6 + $0xd8] sm:$0xff] }
  0x2f   :  { %690 = vmatprep.subr.bf16.mxu0 %v689_v15  ;;  %v703_v38 = vpack.c.bf16 %v69_v35, %v67_v34  ;;  %v705_v39 = vpack.c.bf16 %v74_v37, %v72_v36  ;;  %v71_v40 = vld [vmem:[#allocation6 + $0xc0] sm:$0xff]  ;;  %v73_v41 = vld [vmem:[#allocation6 + $0xd0] sm:$0xff]  ;;  %v76_v42 = vld [vmem:[#allocation6 + $0xe8] sm:$0xff]  ;;  %v369_v36 = vand.u32 1, %v887_v51  ;;  %v364_v37 = vadd.s32 8, %v887_v51 }
  0x30   :  { %v78_v43 = vld [vmem:[#allocation6 + $0xf8] sm:$0xff]  ;;  %v707_v44 = vpack.c.bf16 %v73_v41, %v71_v40  ;;  %v75_v46 = vld [vmem:[#allocation6 + $0xe0] sm:$0xff]  ;;  %v77_v47 = vld [vmem:[#allocation6 + $0xf0] sm:$0xff] }
  0x31   :  { %v709_v45 = vpack.c.bf16 %v78_v43, %v76_v42  ;;  %v711_v48 = vpack.c.bf16 %v77_v47, %v75_v46  ;;  %v46_v49 = vld [vmem:[#allocation3] sm:$0x3]  ;;  %v79_v53 = vld [vmem:[%s953_s2] sm:$0x3]  ;;  %s818_s2 = smov 32   ;;  %vm504_vm5 = vcmp.eq.s32.totalorder %v369_v36, 1 }
  0x32   :  { %692 = vmatpush1.bf16.msra.mxu0 %v691_v20  ;;  %v84_v55 = vrot.slane %v79_v53, %v83_v52  ;;  %v88_v56 = vrot.slane %v79_v53, %v87_v54  ;;  %v221_v57 = vld [vmem:[%s954_s3] sm:$0xf]  ;;  %s820_s3 = smov 64   ;;  %vm389_vm6 = vcmp.eq.s32.totalorder %v369_v36, 0  ;;  %v376_v41 = vand.u32 1, %v364_v37 }
  0x33   :  { %694 = vmatprep.subr.bf16.mxu0 %v693_v21  ;;  %662 = vmatprep.subr.msk.mxu1 %vm222_vm0, %v221_v57  ;;  %v309_v63 = vmul.f32 %v221_v57, %v221_v57 }
  0x34   :  { %663 = vmatpush3.xpose.msk.msra.mxu1 %vm222_vm0, %v221_v57  ;;  %vm505_vm7 = vcmp.eq.s32.totalorder %v376_v41, 1  ;;  %vm390_vm8 = vcmp.eq.s32.totalorder %v376_v41, 0 }
  0x35   :  { %713 = vmatprep.subr.bf16.mxu1 %v821_v62  ;;  %v311_v1 = vsel %vm310_vm2, %v309_v63, 0.0 }
  0x36   :  { %696 = vmatpush1.bf16.msra.mxu0 %v695_v26 }
  0x37   :  { %698 = vmatprep.subr.bf16.mxu0 %v697_v27 }
  0x3a   :  { %700 = vmatpush1.bf16.msra.mxu0 %v699_v32 }
  0x3b   :  { %702 = vmatprep.subr.bf16.mxu0 %v701_v33 }
  0x3e   :  { %704 = vmatpush1.bf16.msra.mxu0 %v703_v38 }
  0x3f   :  { %706 = vmatprep.subr.bf16.mxu0 %v705_v39 }
  0x42   :  { %708 = vmatpush1.bf16.msra.mxu0 %v707_v44 }
  0x43   :  { %710 = vmatprep.subr.bf16.mxu0 %v709_v45 }
  0x46   :  { %712 = vmatpush1.bf16.msra.mxu0 %v711_v48 }
  0x49   :  { %156 = vmatmul.mubr.f32.vlgmr.msra.gmra.mrb[0].mxu0 %v46_v49 }
 0x11c   :  { %v157_v58 = vpop.f32.mrb[0].mxu0 }
 0x11d   :  { %v158_v59 = vadd.f32 %v157_v58, %v84_v55  ;;  %v159_v60 = vpop.f32.mrb[1].mxu0 }
 0x11e   :  { %v160_v61 = vadd.f32 %v159_v60, %v88_v56 }
 0x11f   :  { %165 = vst.msk [vmem:[#allocation2] sm:$0x3] %vm164_vm1, %v158_v59  ;;  %184 = vrot.lane.b32.xlu1 %v158_v59, %s818_s2  ;;  %170 = vrot.lane.b32.xlu0 %v158_v59, %s819_s21 }
 0x120   :  { %192 = vst.msk [vmem:[#allocation2 + $0x8] sm:$0x3] %vm164_vm1, %v160_v61 }
 0x123   :  { %196 = vrot.lane.b32.xlu1 %v160_v61, %s819_s21  ;;  %177 = vrot.lane.b32.xlu0 %v158_v59, %s820_s3 }
 0x127   :  { %210 = vrot.lane.b32.xlu1 %v160_v61, %s818_s2  ;;  %203 = vrot.lane.b32.xlu0 %v160_v61, %s820_s3 }
 0x146   :  { %312 = vadd.xlane.f32.xlu0 %v311_v1 }
 0x191   :  { %v185_v2 = vpop.permute.xlu1 %184  ;;  %v171_v3 = vpop.permute.xlu0 %170 }
 0x192   :  { %188 = vst.msk [vmem:[#allocation2 + $0x6] sm:$0x3] %vm164_vm1, %v185_v2  ;;  %174 = vst.msk [vmem:[#allocation2 + $0x2] sm:$0x3] %vm164_vm1, %v171_v3 }
 0x195   :  { %v197_v4 = vpop.permute.xlu1 %196  ;;  %v178_v5 = vpop.permute.xlu0 %177 }
 0x196   :  { %200 = vst.msk [vmem:[#allocation2 + $0xa] sm:$0x3] %vm164_vm1, %v197_v4  ;;  %181 = vst.msk [vmem:[#allocation2 + $0x4] sm:$0x3] %vm164_vm1, %v178_v5 }
 0x199   :  { %v211_v6 = vpop.permute.xlu1 %210  ;;  %v204_v7 = vpop.permute.xlu0 %203 }
 0x19a   :  { %214 = vst.msk [vmem:[#allocation2 + $0xe] sm:$0x3] %vm164_vm1, %v211_v6  ;;  %207 = vst.msk [vmem:[#allocation2 + $0xc] sm:$0x3] %vm164_vm1, %v204_v7 }
 0x19d   :  { %v219_v8 = vld [vmem:[#allocation2] sm:$0xff] }
 0x19e   :  { %664 = vmatprep.mubr.msk.f32.mxu1 %vm222_vm0, %v219_v8 }
 0x1a1   :  { %v220_v9 = vld [vmem:[#allocation2 + $0x8] sm:$0xff] }
 0x1a2   :  { %v911_v10 = vpack.c.bf16 %v220_v9, %v219_v8  ;;  %665 = vmatmul.mubr.msk.f32.vlgmr.msra.gmra.mrb[0].mxu1 %vm222_vm0, %v220_v9 }
 0x1a3   :  { %671 = vmatprep.mubr.msk.f32.mxu1 %vm822_vm4, %v817_v0 }
 0x1a4   :  { %715 = vmatpush3.bf16.msra.mxu1 %v911_v10 }
 0x1a5   :  { %716 = vmatprep.subr.bf16.mxu1 %v821_v62 }
 0x1d3   :  { %v313_v11 = vpop.xlane.xlu0 %312 }
 0x1d4   :  { %731 = vrsqrt.f32 %v313_v11 }
 0x1de   :  { %v732_v14 = vpop.eup %731 }
 0x1df   :  { %v321_v15 = vrot.slane %v732_v14, %v320_v13 }
 0x275   :  { %v666_v16 = vpop.f32.mrb[0].mxu1 }
 0x276   :  { %v308_v17 = vmul.f32 %v666_v16, %v666_v16  ;;  %v298_v18 = vpop.f32.mrb[1].mxu1 }
 0x277   :  { %v307_v19 = vmul.f32 %v298_v18, %v298_v18 }
 0x278   :  { %v336_v20 = vmul.f32 %v321_v15, %v308_v17 }
 0x279   :  { %v335_v21 = vmul.f32 %v321_v15, %v307_v19 }
 0x27a   :  { %v341_v22 = vsel %vm337_vm3, %v336_v20, -inf }
 0x27b   :  { %342 = vmax.xlane.f32.xlu0 %v341_v22  ;;  %v338_v23 = vsel %vm337_vm3, %v335_v21, -inf }
 0x27c   :  { %339 = vmax.xlane.f32.xlu1 %v338_v23 }
 0x308   :  { %v343_v24 = vpop.xlane.xlu0 %342 }
 0x309   :  { %v345_v25 = vsub.f32 %v336_v20, %v343_v24  ;;  %v340_v26 = vpop.xlane.xlu1 %339 }
 0x30a   :  { %v344_v27 = vsub.f32 %v335_v21, %v340_v26 }
 0x30b   :  { %v348_v28 = vmul.f32 1.442695, %v345_v25 }
 0x30c   :  { %v346_v29 = vmul.f32 1.442695, %v344_v27 }
 0x30d   :  { %733 = vpow2.f32 %v348_v28 }
 0x30e   :  { %735 = vpow2.f32 %v346_v29 }
 0x317   :  { %v734_v30 = vpop.eup %733 }
 0x318   :  { %v736_v31 = vpop.eup %735  ;;  %v353_v32 = vsel %vm337_vm3, %v734_v30, 0.0 }
 0x319   :  { %354 = vadd.xlane.f32.xlu1 %v353_v32  ;;  %v350_v33 = vsel %vm337_vm3, %v736_v31, 0.0 }
 0x31a   :  { %351 = vadd.xlane.f32.xlu0 %v350_v33 }
 0x3a6   :  { %v355_v34 = vpop.xlane.xlu1 %354 }
 0x3a7   :  { %737 = vrcp.f32 %v355_v34  ;;  %v352_v35 = vpop.xlane.xlu0 %351 }
 0x3a8   :  { %739 = vrcp.f32 %v352_v35 }
 0x3b1   :  { %v738_v38 = vpop.eup %737 }
 0x3b2   :  { %v740_v39 = vpop.eup %739  ;;  %v359_v40 = vmul.f32 %v738_v38, %v734_v30 }
 0x3b3   :  { %v358_v42 = vmul.f32 %v740_v39, %v736_v31 }
 0x3b4   :  { %361 = vst.msk [vmem:[%s955_s4 + $0x8] sm:$0xff] %vm337_vm3, %v359_v40  ;;  %v511_v45 = vsel %vm505_vm7, %v359_v40, 0.0  ;;  %v396_v46 = vsel %vm390_vm8, %v359_v40, 0.0 }
 0x3b5   :  { %v510_v43 = vsel %vm504_vm5, %v358_v42, 0.0  ;;  %360 = vst.msk [vmem:[%s955_s4] sm:$0xff] %vm337_vm3, %v358_v42  ;;  %v395_v44 = vsel %vm389_vm6, %v358_v42, 0.0  ;;  %s823_s4 = smov [#allocation8]  }
 0x3b6   :  { %512 = vxpose.xlu1.b32.start [1/2] (short) (narrow) %v510_v43, 8  ;;  %397 = vxpose.xlu0.b32.start [1/2] (short) (narrow) %v395_v44, 8  ;;  %s626_s26 = sshll.u32 %s823_s4, 4  ;;  %s627_s26 = int_to_ptr.vmem [resolvable:$true] %s626_s26 }
 0x3b7   :  { %s785_s27 = scalar_lea.vmem %s627_s26, 128  ;;  %p790_p3 = scmp.lt.s32.totalorder %s627_s26, %s627_s26 }
 0x3b8   :  { %p786_p2 = scmp.ne.s32.totalorder %s627_s26, %s785_s27  ;;  %p791_p4 = scmp.lt.s32.totalorder %s785_s27, %s785_s27 }
 0x3ba   :  { %513 = vxpose.xlu1.b32.end [2/2] (short) (narrow) %v511_v45, 8  ;;  %398 = vxpose.xlu0.b32.end [2/2] (short) (narrow) %v396_v46, 8  ;;  %p792_p5 = por %p791_p4, %p790_p3 }
 0x3bc   :  { %p793_p6 = pnand %p792_p5, %p786_p2 }
 0x436   :  { %v413_v47 = vpop.trf.xlu0  ;;  %v528_v48 = vpop.trf.xlu1 }
 0x437   :  { %672 = vmatmul.mubr.msk.f32.vlgmr.msra.gmra.mrb[2].mxu1 %vm429_vm9, %v413_v47 }
 0x438   :  { %718 = vmatpush3.bf16.msra.mxu1 %v911_v10  ;;  %678 = vmatprep.mubr.msk.f32.mxu1 %vm822_vm4, %v817_v0 }
 0x43b   :  { %679 = vmatmul.mubr.msk.f32.vlgmr.msra.gmra.mrb[4].mxu1 %vm429_vm9, %v528_v48 }
 0x50a   :  { %v499_v49 = vpop.f32.mrb[2].mxu1 }
 0x50b   :  { %503 = vst.msk [vmem:[#allocation8] sm:$0xf] %vm310_vm2, %v499_v49  ;;  %v673_v50 = vpop.f32.mrb[3].mxu1 }
 0x50e   :  { %v613_v51 = vpop.f32.mrb[4].mxu1 }
 0x50f   :  { %618 = vst.msk [vmem:[#allocation8 + $0x4] sm:$0xf] %vm310_vm2, %v613_v51  ;;  %v680_v52 = vpop.f32.mrb[5].mxu1 }
 0x510   :  { %796 = shalt.err (!%p793_p6)
}
 0x511   :  { %s797_s30 = scalar_lea.hbm %s956_s5, 128 }
 0x512   :  { %p798_p7 = scmp.ne.s32.totalorder %s956_s5, %s797_s30  ;;  %p801_p8 = scmp.lt.u32.totalorder %s797_s30, %s956_s5 }
 0x514   :  { %p803_p9 = pnand %p801_p8, %p798_p7 }
 0x516   :  { %806 = shalt.err (!%p803_p9)
}
 0x517   :  { %s824_s10 = smov 4  }
 0x518   :  { %632 = dma.vmem_to_hbm [thread:$0]  %s627_s26, 128, %s956_s5, [#allocation5], %s820_s3, %s820_s3, %s824_s10  }
 0x519   :  { %811 = dma.done.wait [#allocation5], 128  }
 0x51a   :  { %812 = vsyncadd [#allocation5], 4294967168 }
 0x51b   :  { %638 = vsyncpa [#allocation4], 1 }
 0x51c   :  { %639 = vsyncpa [#allocation7], 1 }
 0x51d   :  { %640 = vsyncpa [#allocation5], 1 }

</bundles_post_ra>
